<compile_context>
chip_gen: v7x
topology: tpu7x:2x2x1
jax: 0.10.0
libtpu: 0.0.40
codegen_flags: <defaults>
</compile_context>

<pallas_src>
import functools

import jax
import jax.numpy as jnp
from jax.experimental import pallas as pl
from jax.experimental.pallas import tpu as pltpu


# ----------------------------------------------------------------------------
# Kernel
# ----------------------------------------------------------------------------
def _fused_kernel(xs_ref, wa_ref, ba_ref, winj_ref, we2_ref, be2_ref, out_ref):
    """One batch tile of the fused surrogate + explanation forward pass.

    xs_ref   : [TB, Dp]      (compute dtype)
    wa_ref   : [Dp, 2*Hp]    concat([ws1, we1], axis=1)        (compute dtype)
    ba_ref   : [1, 2*Hp]     concat([bs1, bs2*wey + be1])      (f32)
    winj_ref : [Hp, Hp]      ws2 @ wey                          (compute dtype)
    we2_ref  : [Hp, Dp]                                         (compute dtype)
    be2_ref  : [1, Dp]                                          (f32)
    out_ref  : [TB, Dp]                                         (f32)
    """
    hp = wa_ref.shape[1] // 2  # static

    xs = xs_ref[...]                                                    # [TB, Dp]

    # One wide MXU matmul covers both xs contractions (surrogate + explanation).
    a = jnp.dot(xs, wa_ref[...], preferred_element_type=jnp.float32)    # [TB, 2Hp]
    a = a + ba_ref[...]                                                  # f32 bias add

    # Surrogate hidden layer (static, lane-aligned slice).
    h = jnp.maximum(a[:, :hp], 0.0)                                      # [TB, Hp] f32

    # Explanation hidden layer; the scalar surrogate output has been folded
    # into the dense [Hp, Hp] injection matmul (no [B,1] lane-sparse broadcast).
    e = a[:, hp:] + jnp.dot(h.astype(winj_ref.dtype), winj_ref[...],
                            preferred_element_type=jnp.float32)          # [TB, Hp]
    e = jnp.maximum(e, 0.0)

    # Per-feature weights and contributions.
    w = jnp.dot(e.astype(we2_ref.dtype), we2_ref[...],
                preferred_element_type=jnp.float32) + be2_ref[...]       # [TB, Dp]
    out_ref[...] = (w * xs.astype(jnp.float32)).astype(out_ref.dtype)


# ----------------------------------------------------------------------------
# Wrapper
# ----------------------------------------------------------------------------
def _round_up(x, m):
    return ((x + m - 1) // m) * m


@functools.partial(jax.jit, static_argnames=("compute_dtype", "tile_b"))
def explainable_surrogate_forward(xs, params, *, compute_dtype=jnp.bfloat16,
                                  tile_b=512):
    ws1, bs1, ws2, bs2, we1, wey, be1, we2, be2 = params
    B, D = xs.shape
    H = ws1.shape[1]

    # Lane-dense padded dims (last dim -> multiple of 128).
    Dp = _round_up(D, 128)
    Hp = _round_up(H, 128)
    TILE_B = _round_up(min(tile_b, _round_up(B, 8)), 8)
    Bp = _round_up(B, TILE_B)

    # ---- algebraic folding (done once, outside the kernel) ------------------
    # y*wey = (h@ws2 + bs2)*wey = h @ (ws2@wey) + bs2*wey
    w_inj = ws2 @ wey                     # [H, H]
    b_inj = bs2 * wey + be1               # [1, H]

    # ---- pad to lane-dense shapes, fuse the two xs-contraction weights ------
    def pad2(a, rows, cols):
        return jnp.pad(a, ((0, rows - a.shape[0]), (0, cols - a.shape[1])))

    xs_p   = pad2(xs, Bp, Dp).astype(compute_dtype)
    wa     = jnp.concatenate([pad2(ws1, Dp, Hp), pad2(we1, Dp, Hp)],
                             axis=1).astype(compute_dtype)               # [Dp, 2Hp]
    ba     = jnp.concatenate([pad2(bs1, 1, Hp), pad2(b_inj, 1, Hp)],
                             axis=1).astype(jnp.float32)                 # [1, 2Hp]
    winj_p = pad2(w_inj, Hp, Hp).astype(compute_dtype)
    we2_p  = pad2(we2, Hp, Dp).astype(compute_dtype)
    be2_p  = pad2(be2, 1, Dp).astype(jnp.float32)

    grid = (Bp // TILE_B,)

    itemsize = jnp.dtype(compute_dtype).itemsize
    flops = 2 * Bp * (Dp * 2 * Hp + Hp * Hp + Hp * Dp)
    bytes_accessed = (xs_p.size * itemsize + wa.size * itemsize
                      + winj_p.size * itemsize + we2_p.size * itemsize
                      + ba.size * 4 + be2_p.size * 4 + Bp * Dp * 4)

    out = pl.pallas_call(
        _fused_kernel,
        out_shape=jax.ShapeDtypeStruct((Bp, Dp), jnp.float32),
        grid_spec=pltpu.PrefetchScalarGridSpec(
            num_scalar_prefetch=0,
            grid=grid,
            in_specs=[
                # batch-tiled activations (double-buffered by the pipeline)
                pl.BlockSpec((TILE_B, Dp), lambda i: (i, 0)),
                # weights / biases: same block every step -> VMEM-resident
                pl.BlockSpec((Dp, 2 * Hp), lambda i: (0, 0)),
                pl.BlockSpec((1, 2 * Hp), lambda i: (0, 0)),
                pl.BlockSpec((Hp, Hp), lambda i: (0, 0)),
                pl.BlockSpec((Hp, Dp), lambda i: (0, 0)),
                pl.BlockSpec((1, Dp), lambda i: (0, 0)),
            ],
            out_specs=pl.BlockSpec((TILE_B, Dp), lambda i: (i, 0)),
        ),
        compiler_params=pltpu.CompilerParams(
            dimension_semantics=("parallel",),      # shards across v7x's 2 TCs
            vmem_limit_bytes=32 * 1024 * 1024,      # small footprint; v7x-safe
        ),
        cost_estimate=pl.CostEstimate(flops=flops, transcendentals=0,
                                      bytes_accessed=bytes_accessed),
    )(xs_p, wa, ba, winj_p, we2_p, be2_p)

    return out[:B, :D]


# ----------------------------------------------------------------------------
# Plain-JAX reference (unfolded, f32) and parameter construction
# ----------------------------------------------------------------------------
def _reference(xs, params):
    ws1, bs1, ws2, bs2, we1, wey, be1, we2, be2 = params
    h = jnp.maximum(xs @ ws1 + bs1, 0.0)
    y = h @ ws2 + bs2
    e = jnp.maximum(xs @ we1 + y * wey + be1, 0.0)
    w = e @ we2 + be2
    return w * xs


def make_params(key, D, H):
    ks = jax.random.split(key, 9)
    s = 0.1
    ws1 = s * jax.random.normal(ks[0], (D, H), jnp.float32)
    bs1 = s * jax.random.normal(ks[1], (1, H), jnp.float32)
    ws2 = s * jax.random.normal(ks[2], (H, 1), jnp.float32)
    bs2 = s * jax.random.normal(ks[3], (1, 1), jnp.float32)
    we1 = s * jax.random.normal(ks[4], (D, H), jnp.float32)
    wey = s * jax.random.normal(ks[5], (1, H), jnp.float32)
    be1 = s * jax.random.normal(ks[6], (1, H), jnp.float32)
    we2 = s * jax.random.normal(ks[7], (H, D), jnp.float32)
    be2 = s * jax.random.normal(ks[8], (1, D), jnp.float32)
    return (ws1, bs1, ws2, bs2, we1, wey, be1, we2, be2)


if __name__ == "__main__":
    B, D, H = 8, 16, 32
    key = jax.random.PRNGKey(0)
    k_x, k_p, k_x2 = jax.random.split(key, 3)
    xs = jax.random.normal(k_x, (B, D), jnp.float32)
    params = make_params(k_p, D, H)
    ref = _reference(xs, params)

    # 1) f32 compute path: exact-math check against the unfolded reference.
    out_f32 = jax.block_until_ready(
        explainable_surrogate_forward(xs, params, compute_dtype=jnp.float32))
    assert out_f32.shape == (B, D)
    assert jnp.allclose(out_f32, ref, atol=1e-5, rtol=1e-5), "f32 mismatch"

    # 2) bf16 matmuls / f32 accumulation (the perf-tuned path), loose tolerance.
    out_bf16 = jax.block_until_ready(
        explainable_surrogate_forward(xs, params, compute_dtype=jnp.bfloat16))
    assert jnp.allclose(out_bf16, ref, atol=2e-2, rtol=2e-2), "bf16 mismatch"

    # 3) Multi-step grid (batch not a multiple of the tile) to exercise tiling.
    B2 = 40
    xs2 = jax.random.normal(k_x2, (B2, D), jnp.float32)
    ref2 = _reference(xs2, params)
    out2 = jax.block_until_ready(
        explainable_surrogate_forward(xs2, params, compute_dtype=jnp.bfloat16,
                                      tile_b=16))
    assert out2.shape == (B2, D)
    assert jnp.allclose(out2, ref2, atol=2e-2, rtol=2e-2), "gridded mismatch"

    print("KERNEL_OK")
</pallas_src>

<mosaic_0001>
module attributes {stable_mosaic.version = 11 : i64} {
  func.func @_fused_kernel(%arg0: i32, %arg1: memref<8x128xf32, #tpu.memory_space<vmem>>, %arg2: memref<128x256xf32, #tpu.memory_space<vmem>>, %arg3: memref<1x256xf32, #tpu.memory_space<vmem>>, %arg4: memref<128x128xf32, #tpu.memory_space<vmem>>, %arg5: memref<128x128xf32, #tpu.memory_space<vmem>>, %arg6: memref<1x128xf32, #tpu.memory_space<vmem>>, %arg7: memref<8x128xf32, #tpu.memory_space<vmem>>) attributes {dimension_semantics = [#tpu.dimension_semantics<parallel>], iteration_bounds = array<i64: 1>, scalar_prefetch = 0 : i64, scratch_operands = 0 : i64, tpu.core_type = #tpu.core_type<tc>, window_params = [{transform_indices = @transform_0, window_bounds = array<i64: 8, 128>}, {pipeline_mode = #tpu.pipeline_mode<synchronous>, transform_indices = @transform_1, window_bounds = array<i64: 128, 256>}, {pipeline_mode = #tpu.pipeline_mode<synchronous>, transform_indices = @transform_2, window_bounds = array<i64: 1, 256>}, {pipeline_mode = #tpu.pipeline_mode<synchronous>, transform_indices = @transform_3, window_bounds = array<i64: 128, 128>}, {pipeline_mode = #tpu.pipeline_mode<synchronous>, transform_indices = @transform_4, window_bounds = array<i64: 128, 128>}, {pipeline_mode = #tpu.pipeline_mode<synchronous>, transform_indices = @transform_5, window_bounds = array<i64: 1, 128>}, {transform_indices = @transform_6, window_bounds = array<i64: 8, 128>}]} {
    %c0 = arith.constant 0 : index
    %c0_0 = arith.constant 0 : index
    %0 = vector.load %arg1[%c0, %c0_0] : memref<8x128xf32, #tpu.memory_space<vmem>>, vector<8x128xf32>
    %c0_1 = arith.constant 0 : index
    %c0_2 = arith.constant 0 : index
    %1 = vector.load %arg2[%c0_1, %c0_2] : memref<128x256xf32, #tpu.memory_space<vmem>>, vector<128x256xf32>
    %cst = arith.constant dense<0.000000e+00> : vector<8x256xf32>
    %2 = tpu.matmul %0, %1, %cst {dimension_numbers = #tpu.dot_dimension_numbers<[1], [0], [0], [1], [0, 0, 1, 1], [], []>} : vector<8x128xf32>, vector<128x256xf32>, vector<8x256xf32> -> vector<8x256xf32>
    %c0_3 = arith.constant 0 : index
    %c0_4 = arith.constant 0 : index
    %3 = vector.load %arg3[%c0_3, %c0_4] : memref<1x256xf32, #tpu.memory_space<vmem>>, vector<1x256xf32>
    %4 = vector.broadcast %3 : vector<1x256xf32> to vector<8x256xf32>
    %5 = arith.addf %2, %4 : vector<8x256xf32>
    %6 = vector.extract_strided_slice %5 {offsets = [0, 0], sizes = [8, 128], strides = [1, 1]} : vector<8x256xf32> to vector<8x128xf32>
    %cst_5 = arith.constant 0.000000e+00 : f32
    %7 = vector.broadcast %cst_5 : f32 to vector<8x128xf32>
    %8 = arith.maximumf %6, %7 : vector<8x128xf32>
    %9 = vector.extract_strided_slice %5 {offsets = [0, 128], sizes = [8, 128], strides = [1, 1]} : vector<8x256xf32> to vector<8x128xf32>
    %c0_6 = arith.constant 0 : index
    %c0_7 = arith.constant 0 : index
    %10 = vector.load %arg4[%c0_6, %c0_7] : memref<128x128xf32, #tpu.memory_space<vmem>>, vector<128x128xf32>
    %cst_8 = arith.constant dense<0.000000e+00> : vector<8x128xf32>
    %11 = tpu.matmul %8, %10, %cst_8 {dimension_numbers = #tpu.dot_dimension_numbers<[1], [0], [0], [1], [0, 0, 1, 1], [], []>} : vector<8x128xf32>, vector<128x128xf32>, vector<8x128xf32> -> vector<8x128xf32>
    %12 = arith.addf %9, %11 : vector<8x128xf32>
    %cst_9 = arith.constant 0.000000e+00 : f32
    %13 = vector.broadcast %cst_9 : f32 to vector<8x128xf32>
    %14 = arith.maximumf %12, %13 : vector<8x128xf32>
    %c0_10 = arith.constant 0 : index
    %c0_11 = arith.constant 0 : index
    %15 = vector.load %arg5[%c0_10, %c0_11] : memref<128x128xf32, #tpu.memory_space<vmem>>, vector<128x128xf32>
    %cst_12 = arith.constant dense<0.000000e+00> : vector<8x128xf32>
    %16 = tpu.matmul %14, %15, %cst_12 {dimension_numbers = #tpu.dot_dimension_numbers<[1], [0], [0], [1], [0, 0, 1, 1], [], []>} : vector<8x128xf32>, vector<128x128xf32>, vector<8x128xf32> -> vector<8x128xf32>
    %c0_13 = arith.constant 0 : index
    %c0_14 = arith.constant 0 : index
    %17 = vector.load %arg6[%c0_13, %c0_14] : memref<1x128xf32, #tpu.memory_space<vmem>>, vector<1x128xf32>
    %18 = vector.broadcast %17 : vector<1x128xf32> to vector<8x128xf32>
    %19 = arith.addf %16, %18 : vector<8x128xf32>
    %20 = arith.mulf %19, %0 : vector<8x128xf32>
    %c0_15 = arith.constant 0 : index
    %c0_16 = arith.constant 0 : index
    %21 = vector.load %arg7[%c0_15, %c0_16] : memref<8x128xf32, #tpu.memory_space<vmem>>, vector<8x128xf32>
    tpu.vector_store %arg7[%c0_15, %c0_16], %20 {strides = array<i32>} : memref<8x128xf32, #tpu.memory_space<vmem>>, vector<8x128xf32>,
    return
  }
  func.func @transform_0(%arg0: i32) -> (i32, i32) {
    %c0_i32 = arith.constant 0 : i32
    %c0_i32_0 = arith.constant 0 : i32
    return %arg0, %c0_i32 : i32, i32
  }
  func.func @transform_1(%arg0: i32) -> (i32, i32) {
    %c0_i32 = arith.constant 0 : i32
    %c0_i32_0 = arith.constant 0 : i32
    %c0_i32_1 = arith.constant 0 : i32
    return %c0_i32, %c0_i32_0 : i32, i32
  }
  func.func @transform_2(%arg0: i32) -> (i32, i32) {
    %c0_i32 = arith.constant 0 : i32
    %c0_i32_0 = arith.constant 0 : i32
    %c0_i32_1 = arith.constant 0 : i32
    return %c0_i32, %c0_i32_0 : i32, i32
  }
  func.func @transform_3(%arg0: i32) -> (i32, i32) {
    %c0_i32 = arith.constant 0 : i32
    %c0_i32_0 = arith.constant 0 : i32
    %c0_i32_1 = arith.constant 0 : i32
    return %c0_i32, %c0_i32_0 : i32, i32
  }
  func.func @transform_4(%arg0: i32) -> (i32, i32) {
    %c0_i32 = arith.constant 0 : i32
    %c0_i32_0 = arith.constant 0 : i32
    %c0_i32_1 = arith.constant 0 : i32
    return %c0_i32, %c0_i32_0 : i32, i32
  }
  func.func @transform_5(%arg0: i32) -> (i32, i32) {
    %c0_i32 = arith.constant 0 : i32
    %c0_i32_0 = arith.constant 0 : i32
    %c0_i32_1 = arith.constant 0 : i32
    return %c0_i32, %c0_i32_0 : i32, i32
  }
  func.func @transform_6(%arg0: i32) -> (i32, i32) {
    %c0_i32 = arith.constant 0 : i32
    %c0_i32_0 = arith.constant 0 : i32
    return %arg0, %c0_i32 : i32, i32
  }
}

</mosaic_0001>

<bundles_post_ra>
// kernel: explainable_surrogate_forward.1
= control target key start
LH: loop header
LB: loop body
LE: loop exit
PB: predicated region body
PF: predicated region fallthrough
CT: control target
= control target key end

     0   :  { %v551_v7 = vmov 0.0   ;;  %v552_v8 = vmov 0.0|0.0   ;;  %s826_s0 = inlined_call_operand.vmem [shape: f32[8,128], index: 0, kind: input, shape index: {}]   ;;  %s827_s1 = inlined_call_operand.vmem [shape: f32[128,256], index: 1, kind: input, shape index: {}]   ;;  %s828_s2 = inlined_call_operand.vmem [shape: f32[1,256], index: 2, kind: input, shape index: {}]   ;;  %s829_s3 = inlined_call_operand.vmem [shape: f32[128,128], index: 3, kind: input, shape index: {}]   ;;  %s830_s4 = inlined_call_operand.vmem [shape: f32[128,128], index: 4, kind: input, shape index: {}]   ;;  %s831_s5 = inlined_call_operand.vmem [shape: f32[1,128], index: 5, kind: input, shape index: {}]   ;;  %s832_s6 = inlined_call_operand.hbm [shape: f32[8,128], index: 6, kind: output, shape index: {}]  }
   0x1   :  { %v26_v0 = vld [vmem:[%s827_s1 + $0x8] sm:$0xff]  ;;  %v28_v1 = vld [vmem:[%s827_s1 + $0x18] sm:$0xff]  ;;  %v25_v2 = vld [vmem:[%s827_s1] sm:$0xff]  ;;  %133 = vmatprep.mubr.f32.mxu0 %v551_v7  ;;  %475 = vmatprep.subr.bf16.mxu1 %v552_v8 }
   0x2   :  { %v443_v3 = vpack.c.bf16 %v28_v1, %v26_v0  ;;  %v27_v4 = vld [vmem:[%s827_s1 + $0x10] sm:$0xff]  ;;  %v30_v5 = vld [vmem:[%s827_s1 + $0x28] sm:$0xff]  ;;  %v32_v6 = vld [vmem:[%s827_s1 + $0x38] sm:$0xff] }
   0x3   :  { %v445_v9 = vpack.c.bf16 %v27_v4, %v25_v2  ;;  %v447_v10 = vpack.c.bf16 %v32_v6, %v30_v5  ;;  %v29_v11 = vld [vmem:[%s827_s1 + $0x20] sm:$0xff]  ;;  %v31_v12 = vld [vmem:[%s827_s1 + $0x30] sm:$0xff]  ;;  %v34_v13 = vld [vmem:[%s827_s1 + $0x48] sm:$0xff] }
   0x4   :  { %444 = vmatprep.subr.bf16.mxu0 %v443_v3  ;;  %v36_v14 = vld [vmem:[%s827_s1 + $0x58] sm:$0xff]  ;;  %v449_v15 = vpack.c.bf16 %v31_v12, %v29_v11  ;;  %v33_v17 = vld [vmem:[%s827_s1 + $0x40] sm:$0xff]  ;;  %v35_v18 = vld [vmem:[%s827_s1 + $0x50] sm:$0xff] }
   0x5   :  { %446 = vmatpush1.bf16.msra.mxu0 %v445_v9  ;;  %v451_v16 = vpack.c.bf16 %v36_v14, %v34_v13  ;;  %v38_v19 = vld [vmem:[%s827_s1 + $0x68] sm:$0xff]  ;;  %v40_v20 = vld [vmem:[%s827_s1 + $0x78] sm:$0xff]  ;;  %v453_v21 = vpack.c.bf16 %v35_v18, %v33_v17  ;;  %v37_v23 = vld [vmem:[%s827_s1 + $0x60] sm:$0xff] }
   0x6   :  { %448 = vmatprep.subr.bf16.mxu0 %v447_v10  ;;  %v455_v22 = vpack.c.bf16 %v40_v20, %v38_v19  ;;  %v39_v24 = vld [vmem:[%s827_s1 + $0x70] sm:$0xff]  ;;  %v42_v25 = vld [vmem:[%s827_s1 + $0x88] sm:$0xff]  ;;  %v44_v26 = vld [vmem:[%s827_s1 + $0x98] sm:$0xff] }
   0x7   :  { %v141_v27 = vld [vmem:[%s829_s3] sm:$0xff]  ;;  %v142_v28 = vld [vmem:[%s829_s3 + $0x8] sm:$0xff]  ;;  %v143_v29 = vld [vmem:[%s829_s3 + $0x10] sm:$0xff]  ;;  %v457_v30 = vpack.c.bf16 %v39_v24, %v37_v23  ;;  %v459_v33 = vpack.c.bf16 %v44_v26, %v42_v25 }
   0x8   :  { %v476_v31 = vpack.c.bf16 %v142_v28, %v141_v27  ;;  %v144_v32 = vld [vmem:[%s829_s3 + $0x18] sm:$0xff]  ;;  %v41_v34 = vld [vmem:[%s827_s1 + $0x80] sm:$0xff]  ;;  %v43_v35 = vld [vmem:[%s827_s1 + $0x90] sm:$0xff] }
   0x9   :  { %450 = vmatpush1.bf16.msra.mxu0 %v449_v15  ;;  %v46_v36 = vld [vmem:[%s827_s1 + $0xa8] sm:$0xff]  ;;  %v48_v37 = vld [vmem:[%s827_s1 + $0xb8] sm:$0xff]  ;;  %v479_v38 = vpack.c.bf16 %v144_v32, %v143_v29  ;;  %v145_v39 = vld [vmem:[%s829_s3 + $0x20] sm:$0xff]  ;;  %v461_v41 = vpack.c.bf16 %v43_v35, %v41_v34 }
   0xa   :  { %452 = vmatprep.subr.bf16.mxu0 %v451_v16  ;;  %477 = vmatpush3.bf16.msra.mxu1 %v476_v31  ;;  %v146_v40 = vld [vmem:[%s829_s3 + $0x28] sm:$0xff] }
   0xb   :  { %478 = vmatprep.subr.bf16.mxu1 %v552_v8 }
   0xd   :  { %454 = vmatpush1.bf16.msra.mxu0 %v453_v21 }
   0xe   :  { %456 = vmatprep.subr.bf16.mxu0 %v455_v22 }
  0x11   :  { %458 = vmatpush1.bf16.msra.mxu0 %v457_v30 }
  0x12   :  { %11 = vsyncpa [#allocation3], 0  ;;  %460 = vmatprep.subr.bf16.mxu0 %v459_v33  ;;  %v463_v42 = vpack.c.bf16 %v48_v37, %v46_v36  ;;  %v45_v43 = vld [vmem:[%s827_s1 + $0xa0] sm:$0xff]  ;;  %v47_v44 = vld [vmem:[%s827_s1 + $0xb0] sm:$0xff]  ;;  %480 = vmatpush3.bf16.msra.mxu1 %v479_v38  ;;  %v482_v47 = vpack.c.bf16 %v146_v40, %v145_v39  ;;  %vm553_vm0 = vmmov 0   ;;  %v59_v33 = vlaneseq  ;;  %s554_s28 = smov [#allocation2]  }
  0x13   :  { %v50_v45 = vld [vmem:[%s827_s1 + $0xc8] sm:$0xff]  ;;  %v52_v46 = vld [vmem:[%s827_s1 + $0xd8] sm:$0xff]  ;;  %481 = vmatprep.subr.bf16.mxu1 %v552_v8  ;;  %v147_v48 = vld [vmem:[%s829_s3 + $0x30] sm:$0xff]  ;;  %v465_v50 = vpack.c.bf16 %v47_v44, %v45_v43  ;;  %405 = vmatprep.mubr.msk.f32.mxu1 %vm553_vm0, %v551_v7  ;;  %s330_s29 = sshll.u32 %s554_s28, 4  ;;  %s331_s29 = int_to_ptr.vmem [resolvable:$true] %s330_s29 }
  0x14   :  { %v148_v49 = vld [vmem:[%s829_s3 + $0x38] sm:$0xff]  ;;  %v467_v51 = vpack.c.bf16 %v52_v46, %v50_v45  ;;  %v49_v52 = vld [vmem:[%s827_s1 + $0xc0] sm:$0xff]  ;;  %v51_v53 = vld [vmem:[%s827_s1 + $0xd0] sm:$0xff]  ;;  %v60_v34 = vshrl.u32 %v59_v33, 7  ;;  %p532_p1 = scmp.lt.s32.totalorder %s331_s29, %s331_s29 }
  0x15   :  { %462 = vmatpush1.bf16.msra.mxu0 %v461_v41  ;;  %v54_v54 = vld [vmem:[%s827_s1 + $0xe8] sm:$0xff]  ;;  %v56_v55 = vld [vmem:[%s827_s1 + $0xf8] sm:$0xff]  ;;  %v485_v56 = vpack.c.bf16 %v148_v49, %v147_v48  ;;  %v149_v57 = vld [vmem:[%s829_s3 + $0x40] sm:$0xff]  ;;  %v469_v59 = vpack.c.bf16 %v51_v53, %v49_v52 }
  0x16   :  { %464 = vmatprep.subr.bf16.mxu0 %v463_v42  ;;  %483 = vmatpush3.bf16.msra.mxu1 %v482_v47  ;;  %v150_v58 = vld [vmem:[%s829_s3 + $0x48] sm:$0xff]  ;;  %v471_v60 = vpack.c.bf16 %v56_v55, %v54_v54  ;;  %v53_v61 = vld [vmem:[%s827_s1 + $0xe0] sm:$0xff]  ;;  %v55_v62 = vld [vmem:[%s827_s1 + $0xf0] sm:$0xff]  ;;  %v61_v35 = vsub.s32 0, %v60_v34  ;;  %v65_v44 = vsub.s32 1, %v60_v34 }
  0x17   :  { %484 = vmatprep.subr.bf16.mxu1 %v552_v8  ;;  %v488_v63 = vpack.c.bf16 %v150_v58, %v149_v57  ;;  %v151_v0 = vld [vmem:[%s829_s3 + $0x50] sm:$0xff]  ;;  %v152_v1 = vld [vmem:[%s829_s3 + $0x58] sm:$0xff]  ;;  %v473_v2 = vpack.c.bf16 %v55_v62, %v53_v61  ;;  %v153_v4 = vld [vmem:[%s829_s3 + $0x60] sm:$0xff] }
  0x18   :  { %v491_v3 = vpack.c.bf16 %v152_v1, %v151_v0  ;;  %v154_v5 = vld [vmem:[%s829_s3 + $0x68] sm:$0xff]  ;;  %v738_v6 = vld [vmem:[%s826_s0] sm:$0xff]  ;;  %v155_v10 = vld [vmem:[%s829_s3 + $0x70] sm:$0xff] }
  0x19   :  { %466 = vmatpush1.bf16.msra.mxu0 %v465_v50  ;;  %v494_v9 = vpack.c.bf16 %v154_v5, %v153_v4  ;;  %v156_v11 = vld [vmem:[%s829_s3 + $0x78] sm:$0xff]  ;;  %v229_v13 = vld [vmem:[%s830_s4] sm:$0xff]  ;;  %v230_v14 = vld [vmem:[%s830_s4 + $0x8] sm:$0xff] }
  0x1a   :  { %468 = vmatprep.subr.bf16.mxu0 %v467_v51  ;;  %486 = vmatpush3.bf16.msra.mxu1 %v485_v56  ;;  %v497_v12 = vpack.c.bf16 %v156_v11, %v155_v10  ;;  %v231_v15 = vld [vmem:[%s830_s4 + $0x10] sm:$0xff]  ;;  %v500_v16 = vpack.c.bf16 %v230_v14, %v229_v13  ;;  %v232_v17 = vld [vmem:[%s830_s4 + $0x18] sm:$0xff]  ;;  %v234_v19 = vld [vmem:[%s830_s4 + $0x28] sm:$0xff] }
  0x1b   :  { %487 = vmatprep.subr.bf16.mxu1 %v552_v8  ;;  %v503_v18 = vpack.c.bf16 %v232_v17, %v231_v15  ;;  %v235_v21 = vld [vmem:[%s830_s4 + $0x30] sm:$0xff]  ;;  %v236_v22 = vld [vmem:[%s830_s4 + $0x38] sm:$0xff]  ;;  %v237_v24 = vld [vmem:[%s830_s4 + $0x40] sm:$0xff] }
  0x1c   :  { %v509_v23 = vpack.c.bf16 %v236_v22, %v235_v21  ;;  %v238_v25 = vld [vmem:[%s830_s4 + $0x48] sm:$0xff]  ;;  %v239_v27 = vld [vmem:[%s830_s4 + $0x50] sm:$0xff]  ;;  %v240_v28 = vld [vmem:[%s830_s4 + $0x58] sm:$0xff] }
  0x1d   :  { %470 = vmatpush1.bf16.msra.mxu0 %v469_v59  ;;  %v512_v26 = vpack.c.bf16 %v238_v25, %v237_v24  ;;  %v515_v29 = vpack.c.bf16 %v240_v28, %v239_v27  ;;  %v241_v30 = vld [vmem:[%s830_s4 + $0x60] sm:$0xff]  ;;  %v242_v31 = vld [vmem:[%s830_s4 + $0x68] sm:$0xff]  ;;  %v243_v42 = vld [vmem:[%s830_s4 + $0x70] sm:$0xff] }
  0x1e   :  { %472 = vmatprep.subr.bf16.mxu0 %v471_v60  ;;  %489 = vmatpush3.bf16.msra.mxu1 %v488_v63  ;;  %v518_v32 = vpack.c.bf16 %v242_v31, %v241_v30  ;;  %v57_v36 = vld [vmem:[%s828_s2] sm:$0x3] }
  0x1f   :  { %490 = vmatprep.subr.bf16.mxu1 %v552_v8  ;;  %v62_v37 = vrot.slane %v57_v36, %v61_v35  ;;  %v66_v45 = vrot.slane %v57_v36, %v65_v44  ;;  %v338_v51 = vld [vmem:[%s831_s5] ss:$0 sm:$0xff] }
  0x21   :  { %474 = vmatpush1.bf16.msra.mxu0 %v473_v2 }
  0x22   :  { %499 = vmatprep.subr.bf16.mxu0 %v552_v8  ;;  %492 = vmatpush3.bf16.msra.mxu1 %v491_v3 }
  0x23   :  { %493 = vmatprep.subr.bf16.mxu1 %v552_v8 }
  0x24   :  { %134 = vmatmul.mubr.f32.vlgmr.msra.gmra.mrb[0].mxu0 %v738_v6 }
  0x25   :  { %440 = vmatprep.mubr.msk.f32.mxu0 %vm553_vm0, %v551_v7  ;;  %501 = vmatpush3.bf16.msra.mxu0 %v500_v16  ;;  %v233_v7 = vld [vmem:[%s830_s4 + $0x20] sm:$0xff] }
  0x26   :  { %495 = vmatpush3.bf16.msra.mxu1 %v494_v9  ;;  %502 = vmatprep.subr.bf16.mxu0 %v552_v8  ;;  %v506_v20 = vpack.c.bf16 %v234_v19, %v233_v7 }
  0x27   :  { %496 = vmatprep.subr.bf16.mxu1 %v552_v8 }
  0x29   :  { %504 = vmatpush3.bf16.msra.mxu0 %v503_v18 }
  0x2a   :  { %498 = vmatpush3.bf16.msra.mxu1 %v497_v12  ;;  %505 = vmatprep.subr.bf16.mxu0 %v552_v8 }
  0x2d   :  { %507 = vmatpush3.bf16.msra.mxu0 %v506_v20 }
  0x2e   :  { %508 = vmatprep.subr.bf16.mxu0 %v552_v8 }
  0x31   :  { %510 = vmatpush3.bf16.msra.mxu0 %v509_v23 }
  0x32   :  { %511 = vmatprep.subr.bf16.mxu0 %v552_v8 }
  0x35   :  { %513 = vmatpush3.bf16.msra.mxu0 %v512_v26 }
  0x36   :  { %514 = vmatprep.subr.bf16.mxu0 %v552_v8 }
  0x39   :  { %516 = vmatpush3.bf16.msra.mxu0 %v515_v29 }
  0x3a   :  { %517 = vmatprep.subr.bf16.mxu0 %v552_v8 }
  0x3d   :  { %519 = vmatpush3.bf16.msra.mxu0 %v518_v32 }
  0x3e   :  { %520 = vmatprep.subr.bf16.mxu0 %v552_v8  ;;  %v244_v8 = vld [vmem:[%s830_s4 + $0x78] sm:$0xff]  ;;  %s527_s4 = scalar_lea.vmem %s331_s29, 128 }
  0x3f   :  { %v521_v43 = vpack.c.bf16 %v244_v8, %v243_v42  ;;  %p528_p0 = scmp.ne.s32.totalorder %s331_s29, %s527_s4  ;;  %p533_p2 = scmp.lt.s32.totalorder %s527_s4, %s527_s4 }
  0x41   :  { %522 = vmatpush3.bf16.msra.mxu0 %v521_v43  ;;  %p534_p3 = por %p533_p2, %p532_p1 }
  0x43   :  { %p535_p4 = pnand %p534_p3, %p528_p0 }
  0xf7   :  { %v135_v38 = vpop.f32.mrb[0].mxu0 }
  0xf8   :  { %v136_v39 = vadd.f32 %v135_v38, %v62_v37  ;;  %v137_v40 = vpop.f32.mrb[1].mxu0 }
  0xf9   :  { %v138_v46 = vadd.f32 %v137_v40, %v66_v45 }
  0xfa   :  { %v140_v41 = vmax.f32 %v136_v39, 0.0 }
  0xfc   :  { %406 = vmatmul.mubr.f32.vlgmr.msra.gmra.mrb[0].mxu1 %v140_v41 }
 0x1cf   :  { %v223_v47 = vpop.f32.mrb[0].mxu1 }
 0x1d0   :  { %v227_v48 = vadd.f32 %v223_v47, %v138_v46  ;;  %v407_v49 = vpop.f32.mrb[1].mxu1 }
 0x1d2   :  { %v228_v50 = vmax.f32 %v227_v48, 0.0 }
 0x1d4   :  { %441 = vmatmul.mubr.f32.vlgmr.msra.gmra.mrb[2].mxu0 %v228_v50 }
 0x2a7   :  { %v318_v52 = vpop.f32.mrb[2].mxu0 }
 0x2a8   :  { %v319_v53 = vadd.f32 %v338_v51, %v318_v52  ;;  %v442_v54 = vpop.f32.mrb[3].mxu0 }
 0x2aa   :  { %v322_v55 = vmul.f32 %v319_v53, %v738_v6 }
 0x2ac   :  { %323 = vst [vmem:[#allocation2] sm:$0xff] %v322_v55 }
 0x2ad   :  { %538 = shalt.err (!%p535_p4)
}
 0x2ae   :  { %s539_s5 = scalar_lea.hbm %s832_s6, 128 }
 0x2af   :  { %p540_p5 = scmp.ne.s32.totalorder %s832_s6, %s539_s5  ;;  %p543_p6 = scmp.lt.u32.totalorder %s539_s5, %s832_s6 }
 0x2b1   :  { %p545_p7 = pnand %p543_p6, %p540_p5 }
 0x2b3   :  { %548 = shalt.err (!%p545_p7)
}
 0x2b4   :  { %333 = dma.vmem_to_hbm [thread:$0]  %s331_s29, 128, %s832_s6, [#allocation3]  }
 0x2b5   :  { %549 = dma.done.wait [#allocation3], 128  }
 0x2b6   :  { %550 = vsyncadd [#allocation3], 4294967168 }
 0x2b7   :  { %337 = vsyncpa [#allocation3], 1 }

</bundles_post_ra>
